<compile_context>
chip_gen: v7x
topology: tpu7x:2x2x1
jax: 0.10.0
libtpu: 0.0.40
codegen_flags: <defaults>
</compile_context>

<pallas_src>
import jax
import jax.numpy as jnp
from jax.experimental import pallas as pl
from jax.experimental.pallas import tpu as pltpu

HIDDENSIZE = 32   # fc1 out (matches `hiddensize` in the PyTorch module)
FC2_OUT = 64      # fc2 out
LANE = 128        # TPU vreg lane width


def _round_up(x, m):
    return ((x + m - 1) // m) * m


def _mlp_kernel(x_ref, w1_ref, b1_ref, w2_ref, b2_ref, w3_ref, b3_ref, o_ref):
    # fc1 + relu
    h1 = jnp.dot(x_ref[...], w1_ref[...], preferred_element_type=jnp.float32)
    h1 = jnp.maximum(h1 + b1_ref[...], 0.0)
    # (`.view(-1, 1, hiddensize)` is a pure reshape -> no data movement needed)
    # fc2 + relu
    h2 = jnp.dot(h1, w2_ref[...], preferred_element_type=jnp.float32)
    h2 = jnp.maximum(h2 + b2_ref[...], 0.0)
    # fc3 (no activation)
    out = jnp.dot(h2, w3_ref[...], preferred_element_type=jnp.float32)
    o_ref[...] = out + b3_ref[...]


def prepare_params(params, *, lane_pad=True):
    """One-time parameter prep (run once per optimizer step, NOT per forward).

    lane_pad=True  -> fc3 weight/bias zero-padded to a multiple of 128 output
                      lanes so every output store is an unmasked full-lane vst.
    lane_pad=False -> keep the native narrow output (masked stores, minimal
                      HBM writeback bytes); better on v5e at large batches.
    Returns (prepared_params, outputsize).
    """
    w1, b1, w2, b2, w3, b3 = params
    outputsize = w3.shape[1]
    if lane_pad:
        out_pad = _round_up(max(outputsize, LANE), LANE)
        w3 = jnp.zeros((w3.shape[0], out_pad), w3.dtype).at[:, :outputsize].set(w3)
        b3 = jnp.zeros((1, out_pad), b3.dtype).at[:, :outputsize].set(b3)
    return (w1, b1, w2, b2, w3, b3), outputsize


def net_forward(x, prepared_params, outputsize, *, tb=None):
    """Pallas forward pass of Net. x: (B, inputsize). Returns (B, 1, outputsize)."""
    w1, b1, w2, b2, w3, b3 = prepared_params
    B, inputsize = x.shape
    out_dim = w3.shape[1]  # == outputsize (narrow) or 128-lane-padded

    # Batch tiling: big tiles amortize the ~0.35 us per-step overhead; split
    # into >=2 steps when possible so v7x's second TensorCore has work.
    if tb is None:
        tb = min(4096, max(8, _round_up(-(-B // 2), 8)))
    tb = max(8, _round_up(int(tb), 8))

    # Ragged last block handled by Pallas (masked writeback) -> no jnp.pad of x
    # and no over-allocated output.
    grid = (pl.cdiv(B, tb),)

    # Weights/biases: whole-array, VMEM-resident (not pipelined) — tiny (~45 KB).
    weight_spec = pl.BlockSpec(memory_space=pltpu.MemorySpace.VMEM)

    out = pl.pallas_call(
        _mlp_kernel,
        out_shape=jax.ShapeDtypeStruct((B, out_dim), jnp.float32),
        grid=grid,
        in_specs=[
            pl.BlockSpec((tb, inputsize), lambda i: (i, 0)),  # x: tiled over batch
            weight_spec, weight_spec,                          # w1, b1
            weight_spec, weight_spec,                          # w2, b2
            weight_spec, weight_spec,                          # w3, b3
        ],
        out_specs=pl.BlockSpec((tb, out_dim), lambda i: (i, 0)),
        compiler_params=pltpu.CompilerParams(
            dimension_semantics=("parallel",),   # batch tiles are independent
            vmem_limit_bytes=32 * 1024 * 1024,   # safe: v5e/v6e 128 MiB, v7x 64 MiB physical
        ),
    )(x, w1, b1, w2, b2, w3, b3)

    if out_dim != outputsize:
        out = out[:, :outputsize]   # drop fc3 lane padding (if any)
    # Match PyTorch's (B, 1, outputsize) shape from the .view(-1, 1, hiddensize).
    return out.reshape(B, 1, outputsize)


def init_params(key, inputsize, outputsize):
    """Deterministic parameter init matching the nn.Linear shapes.

    PyTorch Linear(in, out) has weight (out, in); we store (in, out) so the
    kernel computes x @ W + b. Biases are kept 2D (1, out) for clean TPU layout.
    """
    k1, k2, k3, k4, k5, k6 = jax.random.split(key, 6)
    w1 = jax.random.normal(k1, (inputsize, HIDDENSIZE), jnp.float32) * 0.1
    b1 = jax.random.normal(k2, (1, HIDDENSIZE), jnp.float32) * 0.1
    w2 = jax.random.normal(k3, (HIDDENSIZE, FC2_OUT), jnp.float32) * 0.1
    b2 = jax.random.normal(k4, (1, FC2_OUT), jnp.float32) * 0.1
    w3 = jax.random.normal(k5, (FC2_OUT, outputsize), jnp.float32) * 0.1
    b3 = jax.random.normal(k6, (1, outputsize), jnp.float32) * 0.1
    return (w1, b1, w2, b2, w3, b3)


def reference_forward(x, params):
    """Plain-JAX reference for correctness checking."""
    w1, b1, w2, b2, w3, b3 = params
    h1 = jnp.maximum(x @ w1 + b1, 0.0)
    h1 = h1.reshape(-1, 1, HIDDENSIZE)
    h2 = jnp.maximum(h1 @ w2 + b2, 0.0)
    return h2 @ w3 + b3


if __name__ == "__main__":
    key = jax.random.PRNGKey(0)
    kx, kp, kx2 = jax.random.split(key, 3)

    batch = 2
    inputsize = 8     # e.g. state dimension of the DQN environment
    outputsize = 4    # e.g. number of discrete actions

    raw_params = init_params(kp, inputsize, outputsize)

    # One-time param prep: lane-dense fc3 (default) and narrow fc3 (v5e-style).
    params_padded, osz = prepare_params(raw_params, lane_pad=True)
    params_narrow, _ = prepare_params(raw_params, lane_pad=False)

    # Small-batch check (DQN-style inference shape; single ragged block).
    x = jax.random.normal(kx, (batch, inputsize), jnp.float32)
    out = jax.block_until_ready(net_forward(x, params_padded, osz))
    ref = reference_forward(x, raw_params)
    assert out.shape == (batch, 1, outputsize), out.shape
    assert jnp.allclose(out, ref, atol=1e-5, rtol=1e-5), "mismatch vs reference (B=2)"

    # Multi-tile check with a ragged last block: B=40, tb=16 -> grid=(3,),
    # last block has 8 real rows; exercises the lane-padded output path.
    x2 = jax.random.normal(kx2, (40, inputsize), jnp.float32)
    out2 = jax.block_until_ready(net_forward(x2, params_padded, osz, tb=16))
    ref2 = reference_forward(x2, raw_params)
    assert out2.shape == (40, 1, outputsize), out2.shape
    assert jnp.allclose(out2, ref2, atol=1e-5, rtol=1e-5), "mismatch vs reference (B=40)"

    # Narrow (masked-store) output path — the low-writeback option for v5e.
    out3 = jax.block_until_ready(net_forward(x2, params_narrow, osz, tb=16))
    assert out3.shape == (40, 1, outputsize), out3.shape
    assert jnp.allclose(out3, ref2, atol=1e-5, rtol=1e-5), "mismatch vs reference (narrow out)"

    print("KERNEL_OK")
</pallas_src>

<mosaic_0001>
module attributes {stable_mosaic.version = 11 : i64} {
  func.func @_mlp_kernel(%arg0: i32, %arg1: memref<8x8xf32, #tpu.memory_space<vmem>>, %arg2: memref<8x32xf32, #tpu.memory_space<vmem>>, %arg3: memref<1x32xf32, #tpu.memory_space<vmem>>, %arg4: memref<32x64xf32, #tpu.memory_space<vmem>>, %arg5: memref<1x64xf32, #tpu.memory_space<vmem>>, %arg6: memref<64x128xf32, #tpu.memory_space<vmem>>, %arg7: memref<1x128xf32, #tpu.memory_space<vmem>>, %arg8: memref<8x128xf32, #tpu.memory_space<vmem>>) attributes {dimension_semantics = [#tpu.dimension_semantics<parallel>], iteration_bounds = array<i64: 1>, scalar_prefetch = 0 : i64, scratch_operands = 0 : i64, tpu.core_type = #tpu.core_type<tc>, window_params = [{transform_indices = @transform_0, window_bounds = array<i64: 8, 8>}, {pipeline_mode = #tpu.pipeline_mode<synchronous>, transform_indices = @transform_1, window_bounds = array<i64: 8, 32>}, {pipeline_mode = #tpu.pipeline_mode<synchronous>, transform_indices = @transform_2, window_bounds = array<i64: 1, 32>}, {pipeline_mode = #tpu.pipeline_mode<synchronous>, transform_indices = @transform_3, window_bounds = array<i64: 32, 64>}, {pipeline_mode = #tpu.pipeline_mode<synchronous>, transform_indices = @transform_4, window_bounds = array<i64: 1, 64>}, {pipeline_mode = #tpu.pipeline_mode<synchronous>, transform_indices = @transform_5, window_bounds = array<i64: 64, 128>}, {pipeline_mode = #tpu.pipeline_mode<synchronous>, transform_indices = @transform_6, window_bounds = array<i64: 1, 128>}, {transform_indices = @transform_7, window_bounds = array<i64: 8, 128>}]} {
    %c0 = arith.constant 0 : index
    %c0_0 = arith.constant 0 : index
    %0 = vector.load %arg1[%c0, %c0_0] : memref<8x8xf32, #tpu.memory_space<vmem>>, vector<8x8xf32>
    %c0_1 = arith.constant 0 : index
    %c0_2 = arith.constant 0 : index
    %1 = vector.load %arg2[%c0_1, %c0_2] : memref<8x32xf32, #tpu.memory_space<vmem>>, vector<8x32xf32>
    %cst = arith.constant dense<0.000000e+00> : vector<8x32xf32>
    %2 = tpu.matmul %0, %1, %cst {dimension_numbers = #tpu.dot_dimension_numbers<[1], [0], [0], [1], [0, 0, 1, 1], [], []>} : vector<8x8xf32>, vector<8x32xf32>, vector<8x32xf32> -> vector<8x32xf32>
    %c0_3 = arith.constant 0 : index
    %c0_4 = arith.constant 0 : index
    %3 = vector.load %arg3[%c0_3, %c0_4] : memref<1x32xf32, #tpu.memory_space<vmem>>, vector<1x32xf32>
    %4 = vector.broadcast %3 : vector<1x32xf32> to vector<8x32xf32>
    %5 = arith.addf %2, %4 : vector<8x32xf32>
    %cst_5 = arith.constant 0.000000e+00 : f32
    %6 = vector.broadcast %cst_5 : f32 to vector<8x32xf32>
    %7 = arith.maximumf %5, %6 : vector<8x32xf32>
    %c0_6 = arith.constant 0 : index
    %c0_7 = arith.constant 0 : index
    %8 = vector.load %arg4[%c0_6, %c0_7] : memref<32x64xf32, #tpu.memory_space<vmem>>, vector<32x64xf32>
    %cst_8 = arith.constant dense<0.000000e+00> : vector<8x64xf32>
    %9 = tpu.matmul %7, %8, %cst_8 {dimension_numbers = #tpu.dot_dimension_numbers<[1], [0], [0], [1], [0, 0, 1, 1], [], []>} : vector<8x32xf32>, vector<32x64xf32>, vector<8x64xf32> -> vector<8x64xf32>
    %c0_9 = arith.constant 0 : index
    %c0_10 = arith.constant 0 : index
    %10 = vector.load %arg5[%c0_9, %c0_10] : memref<1x64xf32, #tpu.memory_space<vmem>>, vector<1x64xf32>
    %11 = vector.broadcast %10 : vector<1x64xf32> to vector<8x64xf32>
    %12 = arith.addf %9, %11 : vector<8x64xf32>
    %cst_11 = arith.constant 0.000000e+00 : f32
    %13 = vector.broadcast %cst_11 : f32 to vector<8x64xf32>
    %14 = arith.maximumf %12, %13 : vector<8x64xf32>
    %c0_12 = arith.constant 0 : index
    %c0_13 = arith.constant 0 : index
    %15 = vector.load %arg6[%c0_12, %c0_13] : memref<64x128xf32, #tpu.memory_space<vmem>>, vector<64x128xf32>
    %cst_14 = arith.constant dense<0.000000e+00> : vector<8x128xf32>
    %16 = tpu.matmul %14, %15, %cst_14 {dimension_numbers = #tpu.dot_dimension_numbers<[1], [0], [0], [1], [0, 0, 1, 1], [], []>} : vector<8x64xf32>, vector<64x128xf32>, vector<8x128xf32> -> vector<8x128xf32>
    %c0_15 = arith.constant 0 : index
    %c0_16 = arith.constant 0 : index
    %17 = vector.load %arg7[%c0_15, %c0_16] : memref<1x128xf32, #tpu.memory_space<vmem>>, vector<1x128xf32>
    %18 = vector.broadcast %17 : vector<1x128xf32> to vector<8x128xf32>
    %19 = arith.addf %16, %18 : vector<8x128xf32>
    %c0_17 = arith.constant 0 : index
    %c0_18 = arith.constant 0 : index
    %20 = vector.load %arg8[%c0_17, %c0_18] : memref<8x128xf32, #tpu.memory_space<vmem>>, vector<8x128xf32>
    tpu.vector_store %arg8[%c0_17, %c0_18], %19 {strides = array<i32>} : memref<8x128xf32, #tpu.memory_space<vmem>>, vector<8x128xf32>,
    return
  }
  func.func @transform_0(%arg0: i32) -> (i32, i32) {
    %c0_i32 = arith.constant 0 : i32
    %c0_i32_0 = arith.constant 0 : i32
    return %arg0, %c0_i32 : i32, i32
  }
  func.func @transform_1(%arg0: i32) -> (i32, i32) {
    %c0_i32 = arith.constant 0 : i32
    %c0_i32_0 = arith.constant 0 : i32
    %c0_i32_1 = arith.constant 0 : i32
    return %c0_i32, %c0_i32_0 : i32, i32
  }
  func.func @transform_2(%arg0: i32) -> (i32, i32) {
    %c0_i32 = arith.constant 0 : i32
    %c0_i32_0 = arith.constant 0 : i32
    %c0_i32_1 = arith.constant 0 : i32
    return %c0_i32, %c0_i32_0 : i32, i32
  }
  func.func @transform_3(%arg0: i32) -> (i32, i32) {
    %c0_i32 = arith.constant 0 : i32
    %c0_i32_0 = arith.constant 0 : i32
    %c0_i32_1 = arith.constant 0 : i32
    return %c0_i32, %c0_i32_0 : i32, i32
  }
  func.func @transform_4(%arg0: i32) -> (i32, i32) {
    %c0_i32 = arith.constant 0 : i32
    %c0_i32_0 = arith.constant 0 : i32
    %c0_i32_1 = arith.constant 0 : i32
    return %c0_i32, %c0_i32_0 : i32, i32
  }
  func.func @transform_5(%arg0: i32) -> (i32, i32) {
    %c0_i32 = arith.constant 0 : i32
    %c0_i32_0 = arith.constant 0 : i32
    %c0_i32_1 = arith.constant 0 : i32
    return %c0_i32, %c0_i32_0 : i32, i32
  }
  func.func @transform_6(%arg0: i32) -> (i32, i32) {
    %c0_i32 = arith.constant 0 : i32
    %c0_i32_0 = arith.constant 0 : i32
    %c0_i32_1 = arith.constant 0 : i32
    return %c0_i32, %c0_i32_0 : i32, i32
  }
  func.func @transform_7(%arg0: i32) -> (i32, i32) {
    %c0_i32 = arith.constant 0 : i32
    %c0_i32_0 = arith.constant 0 : i32
    return %arg0, %c0_i32 : i32, i32
  }
}

</mosaic_0001>

<bundles_post_ra>
// kernel: tpu_custom_call.1
= control target key start
LH: loop header
LB: loop body
LE: loop exit
PB: predicated region body
PF: predicated region fallthrough
CT: control target
= control target key end

     0   :  { %12 = vsyncpa [#allocation3], 0  ;;  %s699_s0 = inlined_call_operand.hbm [shape: f32[2,8], index: 0, kind: input, shape index: {}]   ;;  %s700_s1 = inlined_call_operand.hbm [shape: f32[8,32], index: 1, kind: input, shape index: {}]   ;;  %s701_s2 = inlined_call_operand.vmem [shape: f32[1,32], index: 2, kind: input, shape index: {}]   ;;  %s702_s3 = inlined_call_operand.hbm [shape: f32[32,64], index: 3, kind: input, shape index: {}]   ;;  %s703_s4 = inlined_call_operand.vmem [shape: f32[1,64], index: 4, kind: input, shape index: {}]   ;;  %s704_s5 = inlined_call_operand.hbm [shape: f32[64,128], index: 5, kind: input, shape index: {}]   ;;  %s705_s6 = inlined_call_operand.vmem [shape: f32[1,128], index: 6, kind: input, shape index: {}]   ;;  %s706_s7 = inlined_call_operand.hbm [shape: f32[2,128], index: 7, kind: output, shape index: {}]  }
   0x1   :  { %13 = vsyncpa [#allocation6], 0 }
   0x2   :  { %14 = vsyncpa [#allocation9], 0 }
   0x3   :  { %15 = vsyncpa [#allocation4], 0 }
   0x4   :  { %20 = vsyncadd [#allocation3], 96  ;;  %s564_s24 = smov [#allocation5]   ;;  %s565_s26 = smov [#allocation2]  }
   0x5   :  { %s34_s25 = sshll.u32 %s564_s24, 4  ;;  %s21_s27 = sshll.u32 %s565_s26, 4  ;;  %s35_s25 = int_to_ptr.vmem [resolvable:$true] %s34_s25  ;;  %s616_s27 = int_to_ptr.vmem [resolvable:$true] %s21_s27 }
   0x6   :  { %s446_s30 = scalar_lea.hbm %s700_s1, 128 }
   0x7   :  { %p447_p0 = scmp.ne.s32.totalorder %s700_s1, %s446_s30  ;;  %p450_p1 = scmp.lt.u32.totalorder %s446_s30, %s700_s1 }
   0x9   :  { %p452_p2 = pnand %p450_p1, %p447_p0 }
   0xb   :  { %455 = shalt.err (!%p452_p2)
}
   0xc   :  { %s456_s12 = scalar_lea.vmem %s35_s25, 128  ;;  %p461_p4 = scmp.lt.s32.totalorder %s35_s25, %s35_s25 }
   0xd   :  { %p457_p3 = scmp.ne.s32.totalorder %s35_s25, %s456_s12  ;;  %p462_p5 = scmp.lt.s32.totalorder %s456_s12, %s456_s12 }
   0xf   :  { %p463_p6 = por %p462_p5, %p461_p4 }
  0x11   :  { %p464_p7 = pnand %p463_p6, %p457_p3 }
  0x13   :  { %467 = shalt.err (!%p464_p7)
}
  0x14   :  { %37 = dma.hbm_to_vmem [thread:$0]  %s700_s1, 128, %s35_s25, [#allocation6]  }
  0x15   :  { %s468_s17 = scalar_lea.hbm %s699_s0, 32 }
  0x16   :  { %p469_p8 = scmp.ne.s32.totalorder %s699_s0, %s468_s17  ;;  %p472_p9 = scmp.lt.u32.totalorder %s468_s17, %s699_s0 }
  0x18   :  { %p474_p10 = pnand %p472_p9, %p469_p8 }
  0x1a   :  { %477 = shalt.err (!%p474_p10)
}
  0x1b   :  { %s478_s22 = scalar_lea.vmem %s616_s27, 32  ;;  %s482_s1 = scalar_lea.vmem %s616_s27, 128 }
  0x1c   :  { %p479_p11 = scmp.ne.s32.totalorder %s616_s27, %s478_s22  ;;  %p483_p12 = scmp.lt.s32.totalorder %s616_s27, %s616_s27 }
  0x1d   :  { %p484_p13 = scmp.lt.s32.totalorder %s482_s1, %s478_s22 }
  0x1f   :  { %p485_p0 = por %p484_p13, %p483_p12 }
  0x21   :  { %p486_p1 = pnand %p485_p0, %p479_p11 }
  0x23   :  { %489 = shalt.err (!%p486_p1)
}
  0x24   :  { %s566_s23 = smov 32   ;;  %s567_s24 = smov 2  }
  0x25   :  { %27 = dma.hbm_to_vmem [thread:$0]  %s699_s0, 32, %s616_s27, [#allocation3], %s566_s23, %s566_s23, %s567_s24  }
  0x26   :  { %s568_s28 = smov [#allocation7]   ;;  %s490_s9 = scalar_lea.hbm %s702_s3, 512 }
  0x27   :  { %s45_s29 = sshll.u32 %s568_s28, 4  ;;  %p491_p2 = scmp.ne.s32.totalorder %s702_s3, %s490_s9  ;;  %s46_s29 = int_to_ptr.vmem [resolvable:$true] %s45_s29 }
  0x28   :  { %p494_p3 = scmp.lt.u32.totalorder %s490_s9, %s702_s3 }
  0x2a   :  { %p496_p4 = pnand %p494_p3, %p491_p2 }
  0x2c   :  { %499 = shalt.err (!%p496_p4)
}
  0x2d   :  { %s500_s14 = scalar_lea.vmem %s46_s29, 512  ;;  %p505_p6 = scmp.lt.s32.totalorder %s46_s29, %s46_s29 }
  0x2e   :  { %p501_p5 = scmp.ne.s32.totalorder %s46_s29, %s500_s14  ;;  %p506_p7 = scmp.lt.s32.totalorder %s500_s14, %s500_s14 }
  0x30   :  { %p507_p8 = por %p506_p7, %p505_p6 }
  0x32   :  { %p508_p9 = pnand %p507_p8, %p501_p5 }
  0x34   :  { %511 = shalt.err (!%p508_p9)
}
  0x35   :  { %s569_s0 = smov 128   ;;  %s570_s27 = smov 8  }
  0x36   :  { %51 = dma.hbm_to_vmem [thread:$0]  %s702_s3, 512, %s46_s29, [#allocation6], %s569_s0, %s569_s0, %s570_s27  }
  0x37   :  { %s571_s17 = smov [#allocation8]   ;;  %s512_s21 = scalar_lea.hbm %s704_s5, 1024 }
  0x38   :  { %s59_s18 = sshll.u32 %s571_s17, 4  ;;  %p513_p10 = scmp.ne.s32.totalorder %s704_s5, %s512_s21  ;;  %s60_s18 = int_to_ptr.vmem [resolvable:$true] %s59_s18 }
  0x39   :  { %p516_p11 = scmp.lt.u32.totalorder %s512_s21, %s704_s5 }
  0x3b   :  { %p518_p12 = pnand %p516_p11, %p513_p10 }
  0x3d   :  { %521 = shalt.err (!%p518_p12)
}
  0x3e   :  { %s522_s28 = scalar_lea.vmem %s60_s18, 1024  ;;  %p527_p0 = scmp.lt.s32.totalorder %s60_s18, %s60_s18 }
  0x3f   :  { %p523_p13 = scmp.ne.s32.totalorder %s60_s18, %s522_s28  ;;  %p528_p1 = scmp.lt.s32.totalorder %s522_s28, %s522_s28 }
  0x41   :  { %p529_p2 = por %p528_p1, %p527_p0 }
  0x43   :  { %p530_p3 = pnand %p529_p2, %p523_p13 }
  0x45   :  { %533 = shalt.err (!%p530_p3)
}
  0x46   :  { %65 = dma.hbm_to_vmem [thread:$0]  %s704_s5, 1024, %s60_s18, [#allocation9], %s569_s0, %s569_s0, %s570_s27  }
  0x47   :  { %556 = dma.done.wait [#allocation3], 128  }
  0x48   :  { %557 = vsyncadd [#allocation3], 4294967168 }
  0x49   :  { %558 = dma.done.wait [#allocation6], 640  }
  0x4a   :  { %559 = vsyncadd [#allocation6], 4294966656 }
  0x4b   :  { %560 = dma.done.wait [#allocation9], 1024  }
  0x4c   :  { %561 = vsyncadd [#allocation9], 4294966272  ;;  %v572_v0 = vmov 0.0   ;;  %vm573_vm0 = vmmov 0   ;;  %v574_v1 = vmov 0.0|0.0   ;;  %vm89_vm1 = vcmask 64512  }
  0x4d   :  { %381 = vmatprep.subr.mxu1 %v572_v0  ;;  %383 = vmatprep.mubr.msk.f32.mxu1 %vm573_vm0, %v572_v0  ;;  %v81_v2 = vld [vmem:[#allocation5] sm:$0xff]  ;;  %v80_v3 = vld [vmem:[#allocation2] sm:$0xff]  ;;  %v164_v4 = vld [vmem:[#allocation7] sm:$0xff]  ;;  %vm175_vm2 = vcmask 261120   ;;  %vm265_vm3 = vcmask 523264  }
  0x4e   :  { %422 = vmatprep.subr.bf16.mxu0 %v574_v1  ;;  %413 = vmatprep.mubr.msk.f32.mxu0 %vm573_vm0, %v572_v0  ;;  %v165_v5 = vld [vmem:[#allocation7 + $0x8] sm:$0xff]  ;;  %v166_v7 = vld [vmem:[#allocation7 + $0x10] sm:$0xff]  ;;  %v167_v8 = vld [vmem:[#allocation7 + $0x18] sm:$0xff] }
  0x4f   :  { %382 = vmatpush3.msra.mxu1 %v81_v2  ;;  %v417_v6 = vpack.c.bf16 %v165_v5, %v164_v4  ;;  %v420_v9 = vpack.c.bf16 %v167_v8, %v166_v7  ;;  %v250_v10 = vld [vmem:[#allocation8] sm:$0xff]  ;;  %v251_v11 = vld [vmem:[#allocation8 + $0x8] sm:$0xff]  ;;  %v252_v12 = vld [vmem:[#allocation8 + $0x10] sm:$0xff] }
  0x50   :  { %384 = vmatmul.mubr.msk.f32.vlgmr.msra.gmra.mrb[0].mxu1 %vm89_vm1, %v80_v3  ;;  %416 = vmatprep.subr.bf16.mxu1 %v574_v1  ;;  %v423_v13 = vpack.c.bf16 %v251_v11, %v250_v10  ;;  %v253_v14 = vld [vmem:[#allocation8 + $0x18] sm:$0xff]  ;;  %v254_v16 = vld [vmem:[#allocation8 + $0x20] sm:$0xff]  ;;  %v255_v17 = vld [vmem:[#allocation8 + $0x28] sm:$0xff] }
  0x51   :  { %394 = vmatprep.mubr.msk.f32.mxu1 %vm573_vm0, %v572_v0  ;;  %418 = vmatpush3.bf16.msra.mxu1 %v417_v6  ;;  %v426_v15 = vpack.c.bf16 %v253_v14, %v252_v12  ;;  %v429_v18 = vpack.c.bf16 %v255_v17, %v254_v16  ;;  %v359_v19 = vld [vmem:[%s701_s2] ss:$0 sm:$0xff]  ;;  %v257_v25 = vld [vmem:[#allocation8 + $0x38] sm:$0xff] }
  0x52   :  { %419 = vmatprep.subr.bf16.mxu1 %v574_v1  ;;  %424 = vmatpush3.bf16.msra.mxu0 %v423_v13  ;;  %v256_v24 = vld [vmem:[#allocation8 + $0x30] sm:$0xff] }
  0x53   :  { %425 = vmatprep.subr.bf16.mxu0 %v574_v1  ;;  %v432_v26 = vpack.c.bf16 %v257_v25, %v256_v24  ;;  %v361_v27 = vld [vmem:[%s703_s4] ss:$0 sm:$0xff] }
  0x54   :  { %v363_v32 = vld [vmem:[%s705_s6] ss:$0 sm:$0xff] }
  0x55   :  { %421 = vmatpush3.bf16.msra.mxu1 %v420_v9 }
  0x56   :  { %427 = vmatpush3.bf16.msra.mxu0 %v426_v15 }
  0x57   :  { %428 = vmatprep.subr.bf16.mxu0 %v574_v1 }
  0x5a   :  { %430 = vmatpush3.bf16.msra.mxu0 %v429_v18 }
  0x5b   :  { %431 = vmatprep.subr.bf16.mxu0 %v574_v1 }
  0x5e   :  { %433 = vmatpush3.bf16.msra.mxu0 %v432_v26 }
 0x123   :  { %v159_v20 = vpop.f32.mrb[0].mxu1 }
 0x124   :  { %v160_v21 = vadd.f32 %v359_v19, %v159_v20  ;;  %v385_v22 = vpop.f32.mrb[1].mxu1 }
 0x126   :  { %v163_v23 = vmax.f32 %v160_v21, 0.0 }
 0x128   :  { %395 = vmatmul.mubr.msk.f32.vlgmr.msra.gmra.mrb[2].mxu1 %vm175_vm2, %v163_v23 }
 0x1fb   :  { %v245_v28 = vpop.f32.mrb[2].mxu1 }
 0x1fc   :  { %v246_v29 = vadd.f32 %v361_v27, %v245_v28  ;;  %v396_v30 = vpop.f32.mrb[3].mxu1 }
 0x1fe   :  { %v249_v31 = vmax.f32 %v246_v29, 0.0 }
 0x200   :  { %414 = vmatmul.mubr.msk.f32.vlgmr.msra.gmra.mrb[0].mxu0 %vm265_vm3, %v249_v31 }
 0x2d3   :  { %v335_v33 = vpop.f32.mrb[0].mxu0 }
 0x2d4   :  { %v336_v34 = vadd.f32 %v363_v32, %v335_v33  ;;  %v415_v35 = vpop.f32.mrb[1].mxu0 }
 0x2d6   :  { %339 = vst [vmem:[#allocation10] sm:$0xff] %v336_v34 }
 0x2d7   :  { %344 = vsyncadd [#allocation4], 96  ;;  %s575_s11 = smov [#allocation10]  }
 0x2d8   :  { %s345_s12 = sshll.u32 %s575_s11, 4  ;;  %s346_s12 = int_to_ptr.vmem [resolvable:$true] %s345_s12 }
 0x2d9   :  { %s534_s13 = scalar_lea.vmem %s346_s12, 32  ;;  %s538_s4 = scalar_lea.vmem %s346_s12, 128 }
 0x2da   :  { %p535_p4 = scmp.ne.s32.totalorder %s346_s12, %s534_s13  ;;  %p539_p5 = scmp.lt.s32.totalorder %s346_s12, %s346_s12 }
 0x2db   :  { %p540_p6 = scmp.lt.s32.totalorder %s538_s4, %s534_s13 }
 0x2dd   :  { %p541_p7 = por %p540_p6, %p539_p5 }
 0x2df   :  { %p542_p8 = pnand %p541_p7, %p535_p4 }
 0x2e1   :  { %545 = shalt.err (!%p542_p8)
}
 0x2e2   :  { %s546_s6 = scalar_lea.hbm %s706_s7, 32 }
 0x2e3   :  { %p547_p9 = scmp.ne.s32.totalorder %s706_s7, %s546_s6  ;;  %p550_p10 = scmp.lt.u32.totalorder %s546_s6, %s706_s7 }
 0x2e5   :  { %p552_p11 = pnand %p550_p10, %p547_p9 }
 0x2e7   :  { %555 = shalt.err (!%p552_p11)
}
 0x2e8   :  { %351 = dma.vmem_to_hbm [thread:$0]  %s346_s12, 32, %s706_s7, [#allocation4], %s566_s23, %s566_s23, %s567_s24  }
 0x2e9   :  { %562 = dma.done.wait [#allocation4], 128  }
 0x2ea   :  { %563 = vsyncadd [#allocation4], 4294967168 }
 0x2eb   :  { %355 = vsyncpa [#allocation3], 1 }
 0x2ec   :  { %356 = vsyncpa [#allocation6], 1 }
 0x2ed   :  { %357 = vsyncpa [#allocation9], 1 }
 0x2ee   :  { %358 = vsyncpa [#allocation4], 1 }

</bundles_post_ra>
